<compile_context>
chip_gen: v7x
topology: tpu7x:2x2x1
jax: 0.10.0
libtpu: 0.0.40
codegen_flags: <defaults>
</compile_context>

<pallas_src>
import functools

import jax
import jax.numpy as jnp
from jax.experimental import pallas as pl
from jax.experimental.pallas import tpu as pltpu


_UNROLL_T_MAX = 16  # fully unroll the recurrence for T <= this (small, static)


def _round_up(x, m):
    return (x + m - 1) // m * m


def _lstm_fc_kernel(x_ref, wih_ref, whh_ref, b_ref, wfc_ref, bfc_ref,
                    out_ref, state_ref, xp_ref, hs_ref,
                    *, seq_len, hidden_size, batch_pad):
    """Whole-sequence LSTM + fc head in one kernel invocation.

    x_ref:     (T*Bp, D)   bf16  flattened, batch-padded sequence
    wih_ref:   (D, 4H)     bf16  W_ih^T
    whh_ref:   (H, 4H)     bf16  W_hh^T
    b_ref:     (1, 4H)     f32   b_ih + b_hh (pre-summed)
    wfc_ref:   (H, O)      bf16  W_fc^T
    bfc_ref:   (1, O)      f32
    out_ref:   (T*Bp, O)   f32   fc(h_t) for all steps
    state_ref: (Bp, 2H)    f32   [h_T | c_T] fused final state
    xp_ref:    (T*Bp, 4H)  f32   scratch: hoisted input projection
    hs_ref:    (T*Bp, H)   f32   scratch: per-step hidden states
    Gate order is PyTorch's (i, f, g, o).
    """
    T = seq_len
    H = hidden_size
    Bp = batch_pad

    # ---- (1) Hoisted input projection: ONE bf16 MXU matmul (f32 accumulate)
    #          for all T steps, parked in VMEM scratch. ----
    xp_ref[...] = (
        jnp.dot(x_ref[...], wih_ref[...], preferred_element_type=jnp.float32)
        + b_ref[...])

    whh = whh_ref[...]                                   # (H, 4H) bf16, resident

    # ---- (2) Serial recurrence (time axis is inherently sequential). ----
    def step(t, carry):
        h, c = carry                                     # f32 (Bp, H)
        row = t * Bp
        if not isinstance(t, int):                       # dynamic-index path
            row = pl.multiple_of(row, Bp)
        gates = xp_ref[pl.ds(row, Bp), :] + jnp.dot(
            h.astype(jnp.bfloat16), whh, preferred_element_type=jnp.float32)
        if 4 * H <= 128:
            # 4H fits one lane group: full-vreg sigmoid + tanh (EUP), then
            # static gate slices.
            sg = jax.nn.sigmoid(gates)
            tg = jnp.tanh(gates)
            i_g = sg[:, 0 * H:1 * H]
            f_g = sg[:, 1 * H:2 * H]
            g_g = tg[:, 2 * H:3 * H]
            o_g = sg[:, 3 * H:4 * H]
        else:
            # Large H: slice first so the single-slot EUP does only the
            # necessary transcendental work per step.
            i_g = jax.nn.sigmoid(gates[:, 0 * H:1 * H])
            f_g = jax.nn.sigmoid(gates[:, 1 * H:2 * H])
            g_g = jnp.tanh(gates[:, 2 * H:3 * H])
            o_g = jax.nn.sigmoid(gates[:, 3 * H:4 * H])
        c = f_g * c + i_g * g_g
        h = o_g * jnp.tanh(c)
        hs_ref[pl.ds(row, Bp), :] = h                    # sublane-aligned store
        return h, c

    h = jnp.zeros((Bp, H), jnp.float32)
    c = jnp.zeros((Bp, H), jnp.float32)
    if T <= _UNROLL_T_MAX:
        # Small static T: full unroll (same codegen as fori_loop(unroll=True));
        # live ranges stay bounded because each h_t goes straight to hs_ref.
        for t in range(T):
            h, c = step(t, (h, c))
    else:
        # Long sequences: rolled loop keeps instruction count / vreg pressure flat.
        h, c = jax.lax.fori_loop(0, T, step, (h, c))

    # ---- (3) fc head hoisted out of the loop: one bf16 (T*Bp, H)@(H, O)
    #          matmul off the scratch slab, written as a single dense store. ----
    out = (jnp.dot(hs_ref[...].astype(jnp.bfloat16), wfc_ref[...],
                   preferred_element_type=jnp.float32) + bfc_ref[...])
    out_ref[...] = out.astype(out_ref.dtype)
    # Final (h, c) fused into one (Bp, 2H) store.
    state_ref[...] = jnp.concatenate([h, c], axis=1).astype(state_ref.dtype)


def chimera_lstm_forward(x, params):
    """x: (T, B, D_in) float32.  Returns (out, (hn, cn)) like PyTorch."""
    T, B, D = x.shape
    H = params["w_hh"].shape[1]          # w_hh: (4H, H)
    O = params["w_fc"].shape[0]          # w_fc: (O, H)
    Bp = _round_up(B, 8)                 # full f32 sublane group per step

    # Pre-transpose weights (row-major (M,K)@(K,N)), pre-sum the LSTM biases,
    # and cast the MXU operands to bf16 (f32 accumulation inside the kernel).
    wih_t = jnp.asarray(params["w_ih"].T, jnp.bfloat16)                # (D, 4H)
    whh_t = jnp.asarray(params["w_hh"].T, jnp.bfloat16)                # (H, 4H)
    b = jnp.asarray((params["b_ih"] + params["b_hh"]).reshape(1, 4 * H),
                    jnp.float32)                                       # (1, 4H)
    wfc_t = jnp.asarray(params["w_fc"].T, jnp.bfloat16)                # (H, O)
    bfc = jnp.asarray(params["b_fc"].reshape(1, O), jnp.float32)       # (1, O)

    # Zero-pad the batch to Bp (padded rows are inert, bounded by sigmoid/tanh)
    # and flatten (T, Bp) so the kernel sees clean 2-D matmul operands.
    x_p = jnp.pad(x.astype(jnp.float32), ((0, 0), (0, Bp - B), (0, 0)))
    x2 = x_p.reshape(T * Bp, D).astype(jnp.bfloat16)

    kernel = functools.partial(_lstm_fc_kernel, seq_len=T, hidden_size=H,
                               batch_pad=Bp)
    vmem = pl.BlockSpec(memory_space=pltpu.MemorySpace.VMEM)  # full array in VMEM

    out2, state = pl.pallas_call(
        kernel,
        out_shape=(
            jax.ShapeDtypeStruct((T * Bp, O), jnp.float32),
            jax.ShapeDtypeStruct((Bp, 2 * H), jnp.float32),
        ),
        in_specs=[vmem] * 6,
        out_specs=(vmem, vmem),
        scratch_shapes=[
            pltpu.VMEM((T * Bp, 4 * H), jnp.float32),   # xp: input projection
            pltpu.VMEM((T * Bp, H), jnp.float32),       # hs: per-step hidden states
        ],
    )(x2, wih_t, whh_t, b, wfc_t, bfc)

    out = out2.reshape(T, Bp, O)[:, :B, :]
    hn = state[:B, :H][None]
    cn = state[:B, H:][None]
    return out, (hn, cn)


def chimera_lstm_ref(x, params):
    """Pure-JAX f32 reference matching PyTorch nn.LSTM + nn.Linear semantics."""
    T, B, D = x.shape
    H = params["w_hh"].shape[1]

    def step(carry, x_t):
        h, c = carry
        gates = (x_t @ params["w_ih"].T + params["b_ih"]
                 + h @ params["w_hh"].T + params["b_hh"])
        i, f, g, o = jnp.split(gates, 4, axis=-1)
        i = jax.nn.sigmoid(i)
        f = jax.nn.sigmoid(f)
        g = jnp.tanh(g)
        o = jax.nn.sigmoid(o)
        c = f * c + i * g
        h = o * jnp.tanh(c)
        return (h, c), h

    h0 = jnp.zeros((B, H), jnp.float32)
    c0 = jnp.zeros((B, H), jnp.float32)
    (hT, cT), hs = jax.lax.scan(step, (h0, c0), x)
    out = hs @ params["w_fc"].T + params["b_fc"]
    return out, (hT[None], cT[None])


def init_params(key, input_size, hidden_size, output_size):
    """Deterministic init mimicking PyTorch U(-1/sqrt(H), 1/sqrt(H))."""
    ks = jax.random.split(key, 6)
    s = 1.0 / jnp.sqrt(hidden_size)
    u = lambda k, shape: jax.random.uniform(k, shape, jnp.float32, -s, s)
    return {
        "w_ih": u(ks[0], (4 * hidden_size, input_size)),
        "w_hh": u(ks[1], (4 * hidden_size, hidden_size)),
        "b_ih": u(ks[2], (4 * hidden_size,)),
        "b_hh": u(ks[3], (4 * hidden_size,)),
        "w_fc": u(ks[4], (output_size, hidden_size)),
        "b_fc": u(ks[5], (output_size,)),
    }


if __name__ == "__main__":
    # Shapes consistent with chimeraLSTM(input_size=16, hidden_size=32),
    # output_size defaults to input_size; batch_first=False -> x is (T, B, D).
    T, B, D, H = 8, 4, 16, 32
    O = D

    key = jax.random.PRNGKey(0)
    k_x, k_p = jax.random.split(key)
    x = jax.random.normal(k_x, (T, B, D), jnp.float32)
    params = init_params(k_p, D, H, O)

    out, (hn, cn) = chimera_lstm_forward(x, params)
    out = jax.block_until_ready(out)
    hn = jax.block_until_ready(hn)
    cn = jax.block_until_ready(cn)

    # Correctness check against the pure-JAX f32 reference.  bf16 MXU operands
    # (with f32 accumulation and f32 h/c state) -> loosened tolerance.
    out_ref, (hn_ref, cn_ref) = chimera_lstm_ref(x, params)
    assert out.shape == (T, B, O) and hn.shape == (1, B, H) and cn.shape == (1, B, H)
    assert jnp.allclose(out, out_ref, atol=5e-2, rtol=5e-2)
    assert jnp.allclose(hn, hn_ref, atol=5e-2, rtol=5e-2)
    assert jnp.allclose(cn, cn_ref, atol=5e-2, rtol=5e-2)

    print("KERNEL_OK")
</pallas_src>

<mosaic_0001>
module attributes {stable_mosaic.version = 11 : i64} {
  func.func @_lstm_fc_kernel(%arg0: memref<64x16xbf16, #tpu.memory_space<vmem>>, %arg1: memref<16x128xbf16, #tpu.memory_space<vmem>>, %arg2: memref<32x128xbf16, #tpu.memory_space<vmem>>, %arg3: memref<1x128xf32, #tpu.memory_space<vmem>>, %arg4: memref<32x16xbf16, #tpu.memory_space<vmem>>, %arg5: memref<1x16xf32, #tpu.memory_space<vmem>>, %arg6: memref<64x16xf32, #tpu.memory_space<vmem>>, %arg7: memref<8x64xf32, #tpu.memory_space<vmem>>, %arg8: memref<64x128xf32, #tpu.memory_space<vmem>>, %arg9: memref<64x32xf32, #tpu.memory_space<vmem>>) attributes {dimension_semantics = [], scalar_prefetch = 0 : i64, scratch_operands = 2 : i64, tpu.core_type = #tpu.core_type<tc>} {
    %c0 = arith.constant 0 : index
    %c0_0 = arith.constant 0 : index
    %0 = vector.load %arg0[%c0, %c0_0] : memref<64x16xbf16, #tpu.memory_space<vmem>>, vector<64x16xbf16>
    %c0_1 = arith.constant 0 : index
    %c0_2 = arith.constant 0 : index
    %1 = vector.load %arg1[%c0_1, %c0_2] : memref<16x128xbf16, #tpu.memory_space<vmem>>, vector<16x128xbf16>
    %cst = arith.constant dense<0.000000e+00> : vector<64x128xf32>
    %2 = tpu.matmul %0, %1, %cst {dimension_numbers = #tpu.dot_dimension_numbers<[1], [0], [0], [1], [0, 0, 1, 1], [], []>} : vector<64x16xbf16>, vector<16x128xbf16>, vector<64x128xf32> -> vector<64x128xf32>
    %c0_3 = arith.constant 0 : index
    %c0_4 = arith.constant 0 : index
    %3 = vector.load %arg3[%c0_3, %c0_4] : memref<1x128xf32, #tpu.memory_space<vmem>>, vector<1x128xf32>
    %4 = vector.broadcast %3 : vector<1x128xf32> to vector<64x128xf32>
    %5 = arith.addf %2, %4 : vector<64x128xf32>
    %c0_5 = arith.constant 0 : index
    %c0_6 = arith.constant 0 : index
    %6 = vector.load %arg8[%c0_5, %c0_6] : memref<64x128xf32, #tpu.memory_space<vmem>>, vector<64x128xf32>
    tpu.vector_store %arg8[%c0_5, %c0_6], %5 {strides = array<i32>} : memref<64x128xf32, #tpu.memory_space<vmem>>, vector<64x128xf32>,
    %c0_7 = arith.constant 0 : index
    %c0_8 = arith.constant 0 : index
    %7 = vector.load %arg2[%c0_7, %c0_8] : memref<32x128xbf16, #tpu.memory_space<vmem>>, vector<32x128xbf16>
    %cst_9 = arith.constant 0.000000e+00 : f32
    %8 = vector.broadcast %cst_9 : f32 to vector<8x32xf32>
    %cst_10 = arith.constant 0.000000e+00 : f32
    %9 = vector.broadcast %cst_10 : f32 to vector<8x32xf32>
    %c0_11 = arith.constant 0 : index
    %c0_12 = arith.constant 0 : index
    %10 = vector.load %arg8[%c0_11, %c0_12] : memref<64x128xf32, #tpu.memory_space<vmem>>, vector<8x128xf32>
    %11 = arith.truncf %8 : vector<8x32xf32> to vector<8x32xbf16>
    %cst_13 = arith.constant dense<0.000000e+00> : vector<8x128xf32>
    %12 = tpu.matmul %11, %7, %cst_13 {dimension_numbers = #tpu.dot_dimension_numbers<[1], [0], [0], [1], [0, 0, 1, 1], [], []>} : vector<8x32xbf16>, vector<32x128xbf16>, vector<8x128xf32> -> vector<8x128xf32>
    %13 = arith.addf %10, %12 : vector<8x128xf32>
    %14 = arith.negf %13 : vector<8x128xf32>
    %15 = math.exp %14 : vector<8x128xf32>
    %cst_14 = arith.constant 1.000000e+00 : f32
    %16 = vector.broadcast %cst_14 : f32 to vector<8x128xf32>
    %17 = arith.addf %16, %15 : vector<8x128xf32>
    %18 = arith.divf %16, %17 : vector<8x128xf32>
    %19 = math.tanh %13 : vector<8x128xf32>
    %20 = vector.extract_strided_slice %18 {offsets = [0, 0], sizes = [8, 32], strides = [1, 1]} : vector<8x128xf32> to vector<8x32xf32>
    %21 = vector.extract_strided_slice %18 {offsets = [0, 32], sizes = [8, 32], strides = [1, 1]} : vector<8x128xf32> to vector<8x32xf32>
    %22 = vector.extract_strided_slice %19 {offsets = [0, 64], sizes = [8, 32], strides = [1, 1]} : vector<8x128xf32> to vector<8x32xf32>
    %23 = vector.extract_strided_slice %18 {offsets = [0, 96], sizes = [8, 32], strides = [1, 1]} : vector<8x128xf32> to vector<8x32xf32>
    %24 = arith.mulf %21, %9 : vector<8x32xf32>
    %25 = arith.mulf %20, %22 : vector<8x32xf32>
    %26 = arith.addf %24, %25 : vector<8x32xf32>
    %27 = math.tanh %26 : vector<8x32xf32>
    %28 = arith.mulf %23, %27 : vector<8x32xf32>
    %c0_15 = arith.constant 0 : index
    %c0_16 = arith.constant 0 : index
    %29 = vector.load %arg9[%c0_15, %c0_16] : memref<64x32xf32, #tpu.memory_space<vmem>>, vector<8x32xf32>
    tpu.vector_store %arg9[%c0_15, %c0_16], %28 {strides = array<i32>} : memref<64x32xf32, #tpu.memory_space<vmem>>, vector<8x32xf32>,
    %c8 = arith.constant 8 : index
    %c0_17 = arith.constant 0 : index
    %30 = vector.load %arg8[%c8, %c0_17] : memref<64x128xf32, #tpu.memory_space<vmem>>, vector<8x128xf32>
    %31 = arith.truncf %28 : vector<8x32xf32> to vector<8x32xbf16>
    %cst_18 = arith.constant dense<0.000000e+00> : vector<8x128xf32>
    %32 = tpu.matmul %31, %7, %cst_18 {dimension_numbers = #tpu.dot_dimension_numbers<[1], [0], [0], [1], [0, 0, 1, 1], [], []>} : vector<8x32xbf16>, vector<32x128xbf16>, vector<8x128xf32> -> vector<8x128xf32>
    %33 = arith.addf %30, %32 : vector<8x128xf32>
    %34 = arith.negf %33 : vector<8x128xf32>
    %35 = math.exp %34 : vector<8x128xf32>
    %cst_19 = arith.constant 1.000000e+00 : f32
    %36 = vector.broadcast %cst_19 : f32 to vector<8x128xf32>
    %37 = arith.addf %36, %35 : vector<8x128xf32>
    %38 = arith.divf %36, %37 : vector<8x128xf32>
    %39 = math.tanh %33 : vector<8x128xf32>
    %40 = vector.extract_strided_slice %38 {offsets = [0, 0], sizes = [8, 32], strides = [1, 1]} : vector<8x128xf32> to vector<8x32xf32>
    %41 = vector.extract_strided_slice %38 {offsets = [0, 32], sizes = [8, 32], strides = [1, 1]} : vector<8x128xf32> to vector<8x32xf32>
    %42 = vector.extract_strided_slice %39 {offsets = [0, 64], sizes = [8, 32], strides = [1, 1]} : vector<8x128xf32> to vector<8x32xf32>
    %43 = vector.extract_strided_slice %38 {offsets = [0, 96], sizes = [8, 32], strides = [1, 1]} : vector<8x128xf32> to vector<8x32xf32>
    %44 = arith.mulf %41, %26 : vector<8x32xf32>
    %45 = arith.mulf %40, %42 : vector<8x32xf32>
    %46 = arith.addf %44, %45 : vector<8x32xf32>
    %47 = math.tanh %46 : vector<8x32xf32>
    %48 = arith.mulf %43, %47 : vector<8x32xf32>
    %c8_20 = arith.constant 8 : index
    %c0_21 = arith.constant 0 : index
    %49 = vector.load %arg9[%c8_20, %c0_21] : memref<64x32xf32, #tpu.memory_space<vmem>>, vector<8x32xf32>
    tpu.vector_store %arg9[%c8_20, %c0_21], %48 {strides = array<i32>} : memref<64x32xf32, #tpu.memory_space<vmem>>, vector<8x32xf32>,
    %c16 = arith.constant 16 : index
    %c0_22 = arith.constant 0 : index
    %50 = vector.load %arg8[%c16, %c0_22] : memref<64x128xf32, #tpu.memory_space<vmem>>, vector<8x128xf32>
    %51 = arith.truncf %48 : vector<8x32xf32> to vector<8x32xbf16>
    %cst_23 = arith.constant dense<0.000000e+00> : vector<8x128xf32>
    %52 = tpu.matmul %51, %7, %cst_23 {dimension_numbers = #tpu.dot_dimension_numbers<[1], [0], [0], [1], [0, 0, 1, 1], [], []>} : vector<8x32xbf16>, vector<32x128xbf16>, vector<8x128xf32> -> vector<8x128xf32>
    %53 = arith.addf %50, %52 : vector<8x128xf32>
    %54 = arith.negf %53 : vector<8x128xf32>
    %55 = math.exp %54 : vector<8x128xf32>
    %cst_24 = arith.constant 1.000000e+00 : f32
    %56 = vector.broadcast %cst_24 : f32 to vector<8x128xf32>
    %57 = arith.addf %56, %55 : vector<8x128xf32>
    %58 = arith.divf %56, %57 : vector<8x128xf32>
    %59 = math.tanh %53 : vector<8x128xf32>
    %60 = vector.extract_strided_slice %58 {offsets = [0, 0], sizes = [8, 32], strides = [1, 1]} : vector<8x128xf32> to vector<8x32xf32>
    %61 = vector.extract_strided_slice %58 {offsets = [0, 32], sizes = [8, 32], strides = [1, 1]} : vector<8x128xf32> to vector<8x32xf32>
    %62 = vector.extract_strided_slice %59 {offsets = [0, 64], sizes = [8, 32], strides = [1, 1]} : vector<8x128xf32> to vector<8x32xf32>
    %63 = vector.extract_strided_slice %58 {offsets = [0, 96], sizes = [8, 32], strides = [1, 1]} : vector<8x128xf32> to vector<8x32xf32>
    %64 = arith.mulf %61, %46 : vector<8x32xf32>
    %65 = arith.mulf %60, %62 : vector<8x32xf32>
    %66 = arith.addf %64, %65 : vector<8x32xf32>
    %67 = math.tanh %66 : vector<8x32xf32>
    %68 = arith.mulf %63, %67 : vector<8x32xf32>
    %c16_25 = arith.constant 16 : index
    %c0_26 = arith.constant 0 : index
    %69 = vector.load %arg9[%c16_25, %c0_26] : memref<64x32xf32, #tpu.memory_space<vmem>>, vector<8x32xf32>
    tpu.vector_store %arg9[%c16_25, %c0_26], %68 {strides = array<i32>} : memref<64x32xf32, #tpu.memory_space<vmem>>, vector<8x32xf32>,
    %c24 = arith.constant 24 : index
    %c0_27 = arith.constant 0 : index
    %70 = vector.load %arg8[%c24, %c0_27] : memref<64x128xf32, #tpu.memory_space<vmem>>, vector<8x128xf32>
    %71 = arith.truncf %68 : vector<8x32xf32> to vector<8x32xbf16>
    %cst_28 = arith.constant dense<0.000000e+00> : vector<8x128xf32>
    %72 = tpu.matmul %71, %7, %cst_28 {dimension_numbers = #tpu.dot_dimension_numbers<[1], [0], [0], [1], [0, 0, 1, 1], [], []>} : vector<8x32xbf16>, vector<32x128xbf16>, vector<8x128xf32> -> vector<8x128xf32>
    %73 = arith.addf %70, %72 : vector<8x128xf32>
    %74 = arith.negf %73 : vector<8x128xf32>
    %75 = math.exp %74 : vector<8x128xf32>
    %cst_29 = arith.constant 1.000000e+00 : f32
    %76 = vector.broadcast %cst_29 : f32 to vector<8x128xf32>
    %77 = arith.addf %76, %75 : vector<8x128xf32>
    %78 = arith.divf %76, %77 : vector<8x128xf32>
    %79 = math.tanh %73 : vector<8x128xf32>
    %80 = vector.extract_strided_slice %78 {offsets = [0, 0], sizes = [8, 32], strides = [1, 1]} : vector<8x128xf32> to vector<8x32xf32>
    %81 = vector.extract_strided_slice %78 {offsets = [0, 32], sizes = [8, 32], strides = [1, 1]} : vector<8x128xf32> to vector<8x32xf32>
    %82 = vector.extract_strided_slice %79 {offsets = [0, 64], sizes = [8, 32], strides = [1, 1]} : vector<8x128xf32> to vector<8x32xf32>
    %83 = vector.extract_strided_slice %78 {offsets = [0, 96], sizes = [8, 32], strides = [1, 1]} : vector<8x128xf32> to vector<8x32xf32>
    %84 = arith.mulf %81, %66 : vector<8x32xf32>
    %85 = arith.mulf %80, %82 : vector<8x32xf32>
    %86 = arith.addf %84, %85 : vector<8x32xf32>
    %87 = math.tanh %86 : vector<8x32xf32>
    %88 = arith.mulf %83, %87 : vector<8x32xf32>
    %c24_30 = arith.constant 24 : index
    %c0_31 = arith.constant 0 : index
    %89 = vector.load %arg9[%c24_30, %c0_31] : memref<64x32xf32, #tpu.memory_space<vmem>>, vector<8x32xf32>
    tpu.vector_store %arg9[%c24_30, %c0_31], %88 {strides = array<i32>} : memref<64x32xf32, #tpu.memory_space<vmem>>, vector<8x32xf32>,
    %c32 = arith.constant 32 : index
    %c0_32 = arith.constant 0 : index
    %90 = vector.load %arg8[%c32, %c0_32] : memref<64x128xf32, #tpu.memory_space<vmem>>, vector<8x128xf32>
    %91 = arith.truncf %88 : vector<8x32xf32> to vector<8x32xbf16>
    %cst_33 = arith.constant dense<0.000000e+00> : vector<8x128xf32>
    %92 = tpu.matmul %91, %7, %cst_33 {dimension_numbers = #tpu.dot_dimension_numbers<[1], [0], [0], [1], [0, 0, 1, 1], [], []>} : vector<8x32xbf16>, vector<32x128xbf16>, vector<8x128xf32> -> vector<8x128xf32>
    %93 = arith.addf %90, %92 : vector<8x128xf32>
    %94 = arith.negf %93 : vector<8x128xf32>
    %95 = math.exp %94 : vector<8x128xf32>
    %cst_34 = arith.constant 1.000000e+00 : f32
    %96 = vector.broadcast %cst_34 : f32 to vector<8x128xf32>
    %97 = arith.addf %96, %95 : vector<8x128xf32>
    %98 = arith.divf %96, %97 : vector<8x128xf32>
    %99 = math.tanh %93 : vector<8x128xf32>
    %100 = vector.extract_strided_slice %98 {offsets = [0, 0], sizes = [8, 32], strides = [1, 1]} : vector<8x128xf32> to vector<8x32xf32>
    %101 = vector.extract_strided_slice %98 {offsets = [0, 32], sizes = [8, 32], strides = [1, 1]} : vector<8x128xf32> to vector<8x32xf32>
    %102 = vector.extract_strided_slice %99 {offsets = [0, 64], sizes = [8, 32], strides = [1, 1]} : vector<8x128xf32> to vector<8x32xf32>
    %103 = vector.extract_strided_slice %98 {offsets = [0, 96], sizes = [8, 32], strides = [1, 1]} : vector<8x128xf32> to vector<8x32xf32>
    %104 = arith.mulf %101, %86 : vector<8x32xf32>
    %105 = arith.mulf %100, %102 : vector<8x32xf32>
    %106 = arith.addf %104, %105 : vector<8x32xf32>
    %107 = math.tanh %106 : vector<8x32xf32>
    %108 = arith.mulf %103, %107 : vector<8x32xf32>
    %c32_35 = arith.constant 32 : index
    %c0_36 = arith.constant 0 : index
    %109 = vector.load %arg9[%c32_35, %c0_36] : memref<64x32xf32, #tpu.memory_space<vmem>>, vector<8x32xf32>
    tpu.vector_store %arg9[%c32_35, %c0_36], %108 {strides = array<i32>} : memref<64x32xf32, #tpu.memory_space<vmem>>, vector<8x32xf32>,
    %c40 = arith.constant 40 : index
    %c0_37 = arith.constant 0 : index
    %110 = vector.load %arg8[%c40, %c0_37] : memref<64x128xf32, #tpu.memory_space<vmem>>, vector<8x128xf32>
    %111 = arith.truncf %108 : vector<8x32xf32> to vector<8x32xbf16>
    %cst_38 = arith.constant dense<0.000000e+00> : vector<8x128xf32>
    %112 = tpu.matmul %111, %7, %cst_38 {dimension_numbers = #tpu.dot_dimension_numbers<[1], [0], [0], [1], [0, 0, 1, 1], [], []>} : vector<8x32xbf16>, vector<32x128xbf16>, vector<8x128xf32> -> vector<8x128xf32>
    %113 = arith.addf %110, %112 : vector<8x128xf32>
    %114 = arith.negf %113 : vector<8x128xf32>
    %115 = math.exp %114 : vector<8x128xf32>
    %cst_39 = arith.constant 1.000000e+00 : f32
    %116 = vector.broadcast %cst_39 : f32 to vector<8x128xf32>
    %117 = arith.addf %116, %115 : vector<8x128xf32>
    %118 = arith.divf %116, %117 : vector<8x128xf32>
    %119 = math.tanh %113 : vector<8x128xf32>
    %120 = vector.extract_strided_slice %118 {offsets = [0, 0], sizes = [8, 32], strides = [1, 1]} : vector<8x128xf32> to vector<8x32xf32>
    %121 = vector.extract_strided_slice %118 {offsets = [0, 32], sizes = [8, 32], strides = [1, 1]} : vector<8x128xf32> to vector<8x32xf32>
    %122 = vector.extract_strided_slice %119 {offsets = [0, 64], sizes = [8, 32], strides = [1, 1]} : vector<8x128xf32> to vector<8x32xf32>
    %123 = vector.extract_strided_slice %118 {offsets = [0, 96], sizes = [8, 32], strides = [1, 1]} : vector<8x128xf32> to vector<8x32xf32>
    %124 = arith.mulf %121, %106 : vector<8x32xf32>
    %125 = arith.mulf %120, %122 : vector<8x32xf32>
    %126 = arith.addf %124, %125 : vector<8x32xf32>
    %127 = math.tanh %126 : vector<8x32xf32>
    %128 = arith.mulf %123, %127 : vector<8x32xf32>
    %c40_40 = arith.constant 40 : index
    %c0_41 = arith.constant 0 : index
    %129 = vector.load %arg9[%c40_40, %c0_41] : memref<64x32xf32, #tpu.memory_space<vmem>>, vector<8x32xf32>
    tpu.vector_store %arg9[%c40_40, %c0_41], %128 {strides = array<i32>} : memref<64x32xf32, #tpu.memory_space<vmem>>, vector<8x32xf32>,
    %c48 = arith.constant 48 : index
    %c0_42 = arith.constant 0 : index
    %130 = vector.load %arg8[%c48, %c0_42] : memref<64x128xf32, #tpu.memory_space<vmem>>, vector<8x128xf32>
    %131 = arith.truncf %128 : vector<8x32xf32> to vector<8x32xbf16>
    %cst_43 = arith.constant dense<0.000000e+00> : vector<8x128xf32>
    %132 = tpu.matmul %131, %7, %cst_43 {dimension_numbers = #tpu.dot_dimension_numbers<[1], [0], [0], [1], [0, 0, 1, 1], [], []>} : vector<8x32xbf16>, vector<32x128xbf16>, vector<8x128xf32> -> vector<8x128xf32>
    %133 = arith.addf %130, %132 : vector<8x128xf32>
    %134 = arith.negf %133 : vector<8x128xf32>
    %135 = math.exp %134 : vector<8x128xf32>
    %cst_44 = arith.constant 1.000000e+00 : f32
    %136 = vector.broadcast %cst_44 : f32 to vector<8x128xf32>
    %137 = arith.addf %136, %135 : vector<8x128xf32>
    %138 = arith.divf %136, %137 : vector<8x128xf32>
    %139 = math.tanh %133 : vector<8x128xf32>
    %140 = vector.extract_strided_slice %138 {offsets = [0, 0], sizes = [8, 32], strides = [1, 1]} : vector<8x128xf32> to vector<8x32xf32>
    %141 = vector.extract_strided_slice %138 {offsets = [0, 32], sizes = [8, 32], strides = [1, 1]} : vector<8x128xf32> to vector<8x32xf32>
    %142 = vector.extract_strided_slice %139 {offsets = [0, 64], sizes = [8, 32], strides = [1, 1]} : vector<8x128xf32> to vector<8x32xf32>
    %143 = vector.extract_strided_slice %138 {offsets = [0, 96], sizes = [8, 32], strides = [1, 1]} : vector<8x128xf32> to vector<8x32xf32>
    %144 = arith.mulf %141, %126 : vector<8x32xf32>
    %145 = arith.mulf %140, %142 : vector<8x32xf32>
    %146 = arith.addf %144, %145 : vector<8x32xf32>
    %147 = math.tanh %146 : vector<8x32xf32>
    %148 = arith.mulf %143, %147 : vector<8x32xf32>
    %c48_45 = arith.constant 48 : index
    %c0_46 = arith.constant 0 : index
    %149 = vector.load %arg9[%c48_45, %c0_46] : memref<64x32xf32, #tpu.memory_space<vmem>>, vector<8x32xf32>
    tpu.vector_store %arg9[%c48_45, %c0_46], %148 {strides = array<i32>} : memref<64x32xf32, #tpu.memory_space<vmem>>, vector<8x32xf32>,
    %c56 = arith.constant 56 : index
    %c0_47 = arith.constant 0 : index
    %150 = vector.load %arg8[%c56, %c0_47] : memref<64x128xf32, #tpu.memory_space<vmem>>, vector<8x128xf32>
    %151 = arith.truncf %148 : vector<8x32xf32> to vector<8x32xbf16>
    %cst_48 = arith.constant dense<0.000000e+00> : vector<8x128xf32>
    %152 = tpu.matmul %151, %7, %cst_48 {dimension_numbers = #tpu.dot_dimension_numbers<[1], [0], [0], [1], [0, 0, 1, 1], [], []>} : vector<8x32xbf16>, vector<32x128xbf16>, vector<8x128xf32> -> vector<8x128xf32>
    %153 = arith.addf %150, %152 : vector<8x128xf32>
    %154 = arith.negf %153 : vector<8x128xf32>
    %155 = math.exp %154 : vector<8x128xf32>
    %cst_49 = arith.constant 1.000000e+00 : f32
    %156 = vector.broadcast %cst_49 : f32 to vector<8x128xf32>
    %157 = arith.addf %156, %155 : vector<8x128xf32>
    %158 = arith.divf %156, %157 : vector<8x128xf32>
    %159 = math.tanh %153 : vector<8x128xf32>
    %160 = vector.extract_strided_slice %158 {offsets = [0, 0], sizes = [8, 32], strides = [1, 1]} : vector<8x128xf32> to vector<8x32xf32>
    %161 = vector.extract_strided_slice %158 {offsets = [0, 32], sizes = [8, 32], strides = [1, 1]} : vector<8x128xf32> to vector<8x32xf32>
    %162 = vector.extract_strided_slice %159 {offsets = [0, 64], sizes = [8, 32], strides = [1, 1]} : vector<8x128xf32> to vector<8x32xf32>
    %163 = vector.extract_strided_slice %158 {offsets = [0, 96], sizes = [8, 32], strides = [1, 1]} : vector<8x128xf32> to vector<8x32xf32>
    %164 = arith.mulf %161, %146 : vector<8x32xf32>
    %165 = arith.mulf %160, %162 : vector<8x32xf32>
    %166 = arith.addf %164, %165 : vector<8x32xf32>
    %167 = math.tanh %166 : vector<8x32xf32>
    %168 = arith.mulf %163, %167 : vector<8x32xf32>
    %c56_50 = arith.constant 56 : index
    %c0_51 = arith.constant 0 : index
    %169 = vector.load %arg9[%c56_50, %c0_51] : memref<64x32xf32, #tpu.memory_space<vmem>>, vector<8x32xf32>
    tpu.vector_store %arg9[%c56_50, %c0_51], %168 {strides = array<i32>} : memref<64x32xf32, #tpu.memory_space<vmem>>, vector<8x32xf32>,
    %c0_52 = arith.constant 0 : index
    %c0_53 = arith.constant 0 : index
    %170 = vector.load %arg9[%c0_52, %c0_53] : memref<64x32xf32, #tpu.memory_space<vmem>>, vector<64x32xf32>
    %171 = arith.truncf %170 : vector<64x32xf32> to vector<64x32xbf16>
    %c0_54 = arith.constant 0 : index
    %c0_55 = arith.constant 0 : index
    %172 = vector.load %arg4[%c0_54, %c0_55] : memref<32x16xbf16, #tpu.memory_space<vmem>>, vector<32x16xbf16>
    %cst_56 = arith.constant dense<0.000000e+00> : vector<64x16xf32>
    %173 = tpu.matmul %171, %172, %cst_56 {dimension_numbers = #tpu.dot_dimension_numbers<[1], [0], [0], [1], [0, 0, 1, 1], [], []>} : vector<64x32xbf16>, vector<32x16xbf16>, vector<64x16xf32> -> vector<64x16xf32>
    %c0_57 = arith.constant 0 : index
    %c0_58 = arith.constant 0 : index
    %174 = vector.load %arg5[%c0_57, %c0_58] : memref<1x16xf32, #tpu.memory_space<vmem>>, vector<1x16xf32>
    %175 = vector.broadcast %174 : vector<1x16xf32> to vector<64x16xf32>
    %176 = arith.addf %173, %175 : vector<64x16xf32>
    %c0_59 = arith.constant 0 : index
    %c0_60 = arith.constant 0 : index
    %177 = vector.load %arg6[%c0_59, %c0_60] : memref<64x16xf32, #tpu.memory_space<vmem>>, vector<64x16xf32>
    tpu.vector_store %arg6[%c0_59, %c0_60], %176 {strides = array<i32>} : memref<64x16xf32, #tpu.memory_space<vmem>>, vector<64x16xf32>,
    %178 = tpu.concatenate %168, %166 in 1 : vector<8x32xf32>, vector<8x32xf32> -> vector<8x64xf32>
    %c0_61 = arith.constant 0 : index
    %c0_62 = arith.constant 0 : index
    %179 = vector.load %arg7[%c0_61, %c0_62] : memref<8x64xf32, #tpu.memory_space<vmem>>, vector<8x64xf32>
    tpu.vector_store %arg7[%c0_61, %c0_62], %178 {strides = array<i32>} : memref<8x64xf32, #tpu.memory_space<vmem>>, vector<8x64xf32>,
    return
  }
}

</mosaic_0001>

<bundles_post_ra>
// kernel: tpu_custom_call.1
= control target key start
LH: loop header
LB: loop body
LE: loop exit
PB: predicated region body
PF: predicated region fallthrough
CT: control target
= control target key end

     0   :  { %vm70_vm0 = vcmask 130048   ;;  %v1194_v4 = vmov 0.0   ;;  %vm1195_vm1 = vmmov 0   ;;  %s1480_s0 = inlined_call_operand.vmem [shape: bf16[64,16], index: 0, kind: input, shape index: {}]   ;;  %s1481_s1 = inlined_call_operand.vmem [shape: bf16[16,128], index: 1, kind: input, shape index: {}]   ;;  %s1482_s2 = inlined_call_operand.vmem [shape: bf16[32,128], index: 2, kind: input, shape index: {}]   ;;  %s1483_s3 = inlined_call_operand.vmem [shape: f32[1,128], index: 3, kind: input, shape index: {}]   ;;  %s1484_s4 = inlined_call_operand.vmem [shape: bf16[32,16], index: 4, kind: input, shape index: {}]   ;;  %s1485_s5 = inlined_call_operand.vmem [shape: f32[1,16], index: 5, kind: input, shape index: {}]   ;;  %s1486_s6 = inlined_call_operand.vmem [shape: f32[64,16], index: 6, kind: output, shape index: {0}]   ;;  %s1487_s7 = inlined_call_operand.hbm [shape: f32[8,64], index: 7, kind: output, shape index: {1}]  }
   0x1   :  { %v1097_v0 = vld [vmem:[%s1481_s1] sm:$0xff]   ;;  %v1098_v1 = vld [vmem:[%s1480_s0 + $0x10] sm:$0xff]   ;;  %v1099_v2 = vld [vmem:[%s1480_s0 + $0x18] sm:$0xff]  }
   0x2   :  { %1089 = vmatprep.subr.bf16.mxu1 %v1097_v0  ;;  %1003 = vmatprep.subr.bf16.mxu0 %v1097_v0  ;;  %v1253_v3 = vld [vmem:[%s1482_s2] sm:$0xff]   ;;  %v1102_v6 = vld [vmem:[%s1480_s0 + $0x8] sm:$0xff]  }
   0x3   :  { %1090 = vmatpush3.bf16.msra.mxu1 %v1097_v0  ;;  %1009 = vmatprep.mubr.msk.bf16.mxu1 %vm70_vm0, %v1098_v1  ;;  %v1101_v5 = vld [vmem:[%s1480_s0] sm:$0xff]   ;;  %v1270_v7 = vld [vmem:[%s1482_s2 + $0x8] sm:$0xff]  }
   0x4   :  { %1004 = vmatpush3.bf16.msra.mxu0 %v1097_v0  ;;  %1013 = vmatprep.subr.bf16.mxu1 %v1194_v4 }
   0x5   :  { %1029 = vmatprep.subr.bf16.mxu0 %v1194_v4  ;;  %1005 = vmatprep.mubr.msk.bf16.mxu0 %vm70_vm0, %v1101_v5 }
   0x6   :  { %1010 = vmatmul.mubr.msk.bf16.vlgmr.msra.gmra.mrb[0].mxu1 %vm70_vm0, %v1099_v2 }
   0x7   :  { %1014 = vmatpush3.bf16.msra.mxu1 %v1253_v3  ;;  %1006 = vmatmul.mubr.msk.bf16.vlgmr.msra.gmra.mrb[0].mxu0 %vm70_vm0, %v1102_v6 }
   0x8   :  { %1015 = vmatprep.subr.bf16.mxu1 %v1194_v4  ;;  %1017 = vmatprep.mubr.msk.bf16.mxu1 %vm1195_vm1, %v1194_v4 }
   0x9   :  { %13 = vsyncpa [#allocation5], 0  ;;  %1030 = vmatpush3.bf16.msra.mxu0 %v1253_v3  ;;  %1033 = vmatprep.mubr.msk.bf16.mxu0 %vm1195_vm1, %v1194_v4  ;;  %v1196_v8 = vmov 0   ;;  %v934_v9 = vld [vmem:[%s1483_s3] ss:$0 sm:$0xff]  ;;  %s1197_s3 = smov 64  }
   0xa   :  { %1031 = vmatprep.subr.bf16.mxu0 %v1194_v4  ;;  %s1198_s14 = smov 32   ;;  %vm173_vm2 = vcmask 261120   ;;  %vm914_vm3 = vcmask 523264  }
   0xb   :  { %1016 = vmatpush3.bf16.msra.mxu1 %v1270_v7 }
   0xc   :  { %1021 = vmatprep.subr.bf16.mxu1 %v1194_v4 }
   0xd   :  { %1032 = vmatpush3.bf16.msra.mxu0 %v1270_v7 }
   0xe   :  { %1018 = vmatmul.mubr.bf16.vlgmr.msra.gmra.mrb[4].mxu1 %v1196_v8  ;;  %1045 = vmatprep.subr.bf16.mxu0 %v1194_v4 }
   0xf   :  { %1022 = vmatpush3.bf16.msra.mxu1 %v1253_v3  ;;  %1025 = vmatprep.mubr.msk.bf16.mxu1 %vm1195_vm1, %v1194_v4 }
  0x10   :  { %1023 = vmatprep.subr.bf16.mxu1 %v1194_v4 }
  0x13   :  { %1024 = vmatpush3.bf16.msra.mxu1 %v1270_v7 }
  0x14   :  { %1037 = vmatprep.subr.bf16.mxu1 %v1194_v4 }
  0xd9   :  { %v1011_v10 = vpop.f32.mrb[0].mxu1 }
  0xda   :  { %v1292_v11 = vadd.f32 %v1011_v10, %v934_v9  ;;  %v133_v12 = vpop.f32.mrb[1].mxu1  ;;  %v1007_v13 = vpop.f32.mrb[0].mxu0 }
  0xdb   :  { %v1294_v14 = vadd.f32 %v934_v9, %v133_v12  ;;  %v1012_v15 = vpop.f32.mrb[2].mxu1  ;;  %v1296_v16 = vadd.f32 %v1007_v13, %v934_v9  ;;  %v117_v17 = vpop.f32.mrb[1].mxu0 }
  0xdc   :  { %v1298_v18 = vadd.f32 %v1012_v15, %v934_v9  ;;  %v136_v19 = vpop.f32.mrb[3].mxu1  ;;  %v1008_v20 = vpop.f32.mrb[2].mxu0  ;;  %v118_v24 = vadd.f32 %v934_v9, %v117_v17 }
  0xdd   :  { %v1300_v21 = vadd.f32 %v934_v9, %v136_v19  ;;  %v1302_v22 = vadd.f32 %v1008_v20, %v934_v9  ;;  %v120_v23 = vpop.f32.mrb[3].mxu0 }
  0xde   :  { %v121_v25 = vadd.f32 %v934_v9, %v120_v23 }
  0xe1   :  { %v211_v26 = vpop.f32.mrb[4].mxu1 }
  0xe2   :  { %v217_v27 = vadd.f32 %v211_v26, %v118_v24  ;;  %v1019_v28 = vpop.f32.mrb[5].mxu1 }
  0xe3   :  { %v214_v29 = vpop.f32.mrb[6].mxu1 }
  0xe4   :  { %1106 = vtanh.f32 %v217_v27  ;;  %v1020_v30 = vpop.f32.mrb[7].mxu1  ;;  %v946_v32 = vmul.f32 -1.442695, %v217_v27 }
  0xe6   :  { %1108 = vpow2.f32 %v946_v32 }
  0xee   :  { %v1107_v31 = vpop.eup %1106 }
  0xef   :  { %227 = vrot.lane.b32.xlu0 %v1107_v31, %s1197_s3 }
  0xf0   :  { %v1109_v33 = vpop.eup %1108 }
  0xf1   :  { %v221_v34 = vadd.f32 1.0, %v1109_v33 }
  0xf3   :  { %1110 = vrcp.f32 %v221_v34 }
  0xfd   :  { %v1111_v35 = vpop.eup %1110 }
  0xfe   :  { %v225_v38 = vmul.f32 0.0, %v1111_v35 }
 0x161   :  { %v228_v36 = vpop.permute.xlu0 %227 }
 0x162   :  { %v230_v37 = vmul.f32 %v1111_v35, %v228_v36 }
 0x164   :  { %232 = vrot.lane.b32.xlu0 %v230_v37, %s1198_s14 }
 0x1d6   :  { %v233_v39 = vpop.permute.xlu0 %232 }
 0x1d7   :  { %v235_v40 = vadd.f32 %v233_v39, %v225_v38 }
 0x1d9   :  { %1112 = vtanh.f32 %v235_v40 }
 0x1e3   :  { %v1113_v41 = vpop.eup %1112 }
 0x1e4   :  { %238 = vrot.lane.b32.xlu1 %v1113_v41, %s1197_s3 }
 0x256   :  { %v239_v42 = vpop.permute.xlu1 %238 }
 0x257   :  { %v1307_v43 = vmul.f32 %v1111_v35, %v239_v42 }
 0x259   :  { %v248_v44 = vpack.c.bf16 %v1307_v43, %v1307_v43 }
 0x25b   :  { %250 = vrot.lane.b32.xlu1 %v248_v44, %s1198_s14 }
 0x2cd   :  { %v251_v45 = vpop.permute.xlu1 %250 }
 0x2ce   :  { %1026 = vmatmul.mubr.msk.bf16.vlgmr.msra.gmra.mrb[8].mxu1 %vm173_vm2, %v251_v45 }
 0x2cf   :  { %1038 = vmatpush3.bf16.msra.mxu1 %v1253_v3  ;;  %1041 = vmatprep.mubr.msk.bf16.mxu1 %vm1195_vm1, %v1194_v4 }
 0x2d0   :  { %1039 = vmatprep.subr.bf16.mxu1 %v1194_v4 }
 0x2d3   :  { %1040 = vmatpush3.bf16.msra.mxu1 %v1270_v7 }
 0x2d4   :  { %1053 = vmatprep.subr.bf16.mxu1 %v1194_v4 }
 0x3a1   :  { %v289_v46 = vpop.f32.mrb[8].mxu1 }
 0x3a2   :  { %v295_v47 = vadd.f32 %v289_v46, %v121_v25  ;;  %v1027_v48 = vpop.f32.mrb[9].mxu1 }
 0x3a3   :  { %v292_v49 = vpop.f32.mrb[10].mxu1 }
 0x3a4   :  { %1114 = vtanh.f32 %v295_v47  ;;  %v1028_v50 = vpop.f32.mrb[11].mxu1  ;;  %v948_v52 = vmul.f32 -1.442695, %v295_v47 }
 0x3a6   :  { %1116 = vpow2.f32 %v948_v52 }
 0x3ae   :  { %v1115_v51 = vpop.eup %1114 }
 0x3af   :  { %305 = vrot.lane.b32.xlu0 %v1115_v51, %s1197_s3 }
 0x3b0   :  { %v1117_v53 = vpop.eup %1116 }
 0x3b1   :  { %v299_v54 = vadd.f32 1.0, %v1117_v53 }
 0x3b3   :  { %1118 = vrcp.f32 %v299_v54 }
 0x3bd   :  { %v1119_v55 = vpop.eup %1118 }
 0x3be   :  { %v303_v58 = vmul.f32 %v1119_v55, %v235_v40 }
 0x421   :  { %v306_v56 = vpop.permute.xlu0 %305 }
 0x422   :  { %v308_v57 = vmul.f32 %v1119_v55, %v306_v56 }
 0x424   :  { %310 = vrot.lane.b32.xlu1 %v308_v57, %s1198_s14 }
 0x496   :  { %v311_v59 = vpop.permute.xlu1 %310 }
 0x497   :  { %v313_v60 = vadd.f32 %v311_v59, %v303_v58 }
 0x499   :  { %1120 = vtanh.f32 %v313_v60 }
 0x4a3   :  { %v1121_v61 = vpop.eup %1120 }
 0x4a4   :  { %316 = vrot.lane.b32.xlu0 %v1121_v61, %s1197_s3 }
 0x516   :  { %v317_v62 = vpop.permute.xlu0 %316 }
 0x517   :  { %v1322_v63 = vmul.f32 %v1119_v55, %v317_v62 }
 0x519   :  { %v326_v0 = vpack.c.bf16 %v1322_v63, %v1322_v63 }
 0x51b   :  { %328 = vrot.lane.b32.xlu1 %v326_v0, %s1198_s14 }
 0x58d   :  { %v329_v1 = vpop.permute.xlu1 %328 }
 0x58e   :  { %1034 = vmatmul.mubr.msk.bf16.vlgmr.msra.gmra.mrb[4].mxu0 %vm173_vm2, %v329_v1 }
 0x58f   :  { %1046 = vmatpush3.bf16.msra.mxu0 %v1253_v3  ;;  %1049 = vmatprep.mubr.msk.bf16.mxu0 %vm1195_vm1, %v1194_v4 }
 0x590   :  { %1047 = vmatprep.subr.bf16.mxu0 %v1194_v4 }
 0x593   :  { %1048 = vmatpush3.bf16.msra.mxu0 %v1270_v7 }
 0x594   :  { %1061 = vmatprep.subr.bf16.mxu0 %v1194_v4 }
 0x661   :  { %v367_v2 = vpop.f32.mrb[4].mxu0 }
 0x662   :  { %v373_v5 = vadd.f32 %v367_v2, %v1296_v16  ;;  %v1035_v6 = vpop.f32.mrb[5].mxu0 }
 0x663   :  { %v370_v8 = vpop.f32.mrb[6].mxu0 }
 0x664   :  { %1122 = vtanh.f32 %v373_v5  ;;  %v1036_v9 = vpop.f32.mrb[7].mxu0  ;;  %v950_v12 = vmul.f32 -1.442695, %v373_v5 }
 0x666   :  { %1124 = vpow2.f32 %v950_v12 }
 0x66e   :  { %v1123_v10 = vpop.eup %1122 }
 0x66f   :  { %383 = vrot.lane.b32.xlu0 %v1123_v10, %s1197_s3 }
 0x670   :  { %v1125_v13 = vpop.eup %1124 }
 0x671   :  { %v377_v15 = vadd.f32 1.0, %v1125_v13 }
 0x673   :  { %1126 = vrcp.f32 %v377_v15 }
 0x67d   :  { %v1127_v17 = vpop.eup %1126 }
 0x67e   :  { %v381_v23 = vmul.f32 %v1127_v17, %v313_v60 }
 0x6e1   :  { %v384_v19 = vpop.permute.xlu0 %383 }
 0x6e2   :  { %v386_v20 = vmul.f32 %v1127_v17, %v384_v19 }
 0x6e4   :  { %388 = vrot.lane.b32.xlu1 %v386_v20, %s1198_s14 }
 0x756   :  { %v389_v24 = vpop.permute.xlu1 %388 }
 0x757   :  { %v391_v16 = vadd.f32 %v389_v24, %v381_v23 }
 0x759   :  { %1128 = vtanh.f32 %v391_v16 }
 0x763   :  { %v1129_v25 = vpop.eup %1128 }
 0x764   :  { %394 = vrot.lane.b32.xlu0 %v1129_v25, %s1197_s3 }
 0x7d6   :  { %v395_v26 = vpop.permute.xlu0 %394 }
 0x7d7   :  { %v1338_v27 = vmul.f32 %v1127_v17, %v395_v26 }
 0x7d9   :  { %v404_v28 = vpack.c.bf16 %v1338_v27, %v1338_v27 }
 0x7db   :  { %406 = vrot.lane.b32.xlu1 %v404_v28, %s1198_s14 }
 0x84d   :  { %v407_v29 = vpop.permute.xlu1 %406 }
 0x84e   :  { %1042 = vmatmul.mubr.msk.bf16.vlgmr.msra.gmra.mrb[12].mxu1 %vm173_vm2, %v407_v29 }
 0x84f   :  { %1054 = vmatpush3.bf16.msra.mxu1 %v1253_v3  ;;  %1057 = vmatprep.mubr.msk.bf16.mxu1 %vm1195_vm1, %v1194_v4 }
 0x850   :  { %1055 = vmatprep.subr.bf16.mxu1 %v1194_v4 }
 0x853   :  { %1056 = vmatpush3.bf16.msra.mxu1 %v1270_v7 }
 0x854   :  { %1069 = vmatprep.subr.bf16.mxu1 %v1194_v4 }
 0x921   :  { %v445_v30 = vpop.f32.mrb[12].mxu1 }
 0x922   :  { %v451_v31 = vadd.f32 %v445_v30, %v1302_v22  ;;  %v1043_v32 = vpop.f32.mrb[13].mxu1 }
 0x923   :  { %v448_v33 = vpop.f32.mrb[14].mxu1 }
 0x924   :  { %1130 = vtanh.f32 %v451_v31  ;;  %v1044_v34 = vpop.f32.mrb[15].mxu1  ;;  %v952_v36 = vmul.f32 -1.442695, %v451_v31 }
 0x926   :  { %1132 = vpow2.f32 %v952_v36 }
 0x92e   :  { %v1131_v35 = vpop.eup %1130 }
 0x92f   :  { %461 = vrot.lane.b32.xlu0 %v1131_v35, %s1197_s3 }
 0x930   :  { %v1133_v37 = vpop.eup %1132 }
 0x931   :  { %v455_v38 = vadd.f32 1.0, %v1133_v37 }
 0x933   :  { %1134 = vrcp.f32 %v455_v38 }
 0x93d   :  { %v1135_v39 = vpop.eup %1134 }
 0x93e   :  { %v459_v42 = vmul.f32 %v1135_v39, %v391_v16 }
 0x9a1   :  { %v462_v40 = vpop.permute.xlu0 %461 }
 0x9a2   :  { %v464_v41 = vmul.f32 %v1135_v39, %v462_v40 }
 0x9a4   :  { %466 = vrot.lane.b32.xlu1 %v464_v41, %s1198_s14 }
 0xa16   :  { %v467_v44 = vpop.permute.xlu1 %466 }
 0xa17   :  { %v469_v22 = vadd.f32 %v467_v44, %v459_v42 }
 0xa19   :  { %1136 = vtanh.f32 %v469_v22 }
 0xa23   :  { %v1137_v45 = vpop.eup %1136 }
 0xa24   :  { %472 = vrot.lane.b32.xlu0 %v1137_v45, %s1197_s3 }
 0xa96   :  { %v473_v46 = vpop.permute.xlu0 %472 }
 0xa97   :  { %v1354_v47 = vmul.f32 %v1135_v39, %v473_v46 }
 0xa99   :  { %v482_v48 = vpack.c.bf16 %v1354_v47, %v1354_v47 }
 0xa9b   :  { %484 = vrot.lane.b32.xlu1 %v482_v48, %s1198_s14 }
 0xb0d   :  { %v485_v49 = vpop.permute.xlu1 %484 }
 0xb0e   :  { %1050 = vmatmul.mubr.msk.bf16.vlgmr.msra.gmra.mrb[8].mxu0 %vm173_vm2, %v485_v49 }
 0xb0f   :  { %1062 = vmatpush3.bf16.msra.mxu0 %v1253_v3  ;;  %1065 = vmatprep.mubr.msk.bf16.mxu0 %vm1195_vm1, %v1194_v4 }
 0xb10   :  { %1063 = vmatprep.subr.bf16.mxu0 %v1194_v4 }
 0xb13   :  { %1064 = vmatpush3.bf16.msra.mxu0 %v1270_v7 }
 0xbe1   :  { %v523_v50 = vpop.f32.mrb[8].mxu0 }
 0xbe2   :  { %v529_v51 = vadd.f32 %v523_v50, %v1294_v14  ;;  %v1051_v52 = vpop.f32.mrb[9].mxu0 }
 0xbe3   :  { %v526_v53 = vpop.f32.mrb[10].mxu0 }
 0xbe4   :  { %1138 = vtanh.f32 %v529_v51  ;;  %v1052_v54 = vpop.f32.mrb[11].mxu0  ;;  %v954_v56 = vmul.f32 -1.442695, %v529_v51 }
 0xbe6   :  { %1140 = vpow2.f32 %v954_v56 }
 0xbee   :  { %v1139_v55 = vpop.eup %1138 }
 0xbef   :  { %539 = vrot.lane.b32.xlu0 %v1139_v55, %s1197_s3 }
 0xbf0   :  { %v1141_v57 = vpop.eup %1140 }
 0xbf1   :  { %v533_v58 = vadd.f32 1.0, %v1141_v57 }
 0xbf3   :  { %1142 = vrcp.f32 %v533_v58 }
 0xbfd   :  { %v1143_v59 = vpop.eup %1142 }
 0xbfe   :  { %v537_v62 = vmul.f32 %v1143_v59, %v469_v22 }
 0xc61   :  { %v540_v60 = vpop.permute.xlu0 %539 }
 0xc62   :  { %v542_v61 = vmul.f32 %v1143_v59, %v540_v60 }
 0xc64   :  { %544 = vrot.lane.b32.xlu1 %v542_v61, %s1198_s14 }
 0xcd6   :  { %v545_v0 = vpop.permute.xlu1 %544 }
 0xcd7   :  { %v547_v14 = vadd.f32 %v545_v0, %v537_v62 }
 0xcd9   :  { %1144 = vtanh.f32 %v547_v14 }
 0xce3   :  { %v1145_v1 = vpop.eup %1144 }
 0xce4   :  { %550 = vrot.lane.b32.xlu0 %v1145_v1, %s1197_s3 }
 0xd56   :  { %v551_v2 = vpop.permute.xlu0 %550 }
 0xd57   :  { %v1369_v5 = vmul.f32 %v1143_v59, %v551_v2 }
 0xd59   :  { %v560_v6 = vpack.c.bf16 %v1369_v5, %v1369_v5 }
 0xd5b   :  { %562 = vrot.lane.b32.xlu1 %v560_v6, %s1198_s14  ;;  %v1105_v6 = vld [vmem:[%s1484_s4 + $0x8] sm:$0xff]  }
 0xdcd   :  { %v563_v8 = vpop.permute.xlu1 %562 }
 0xdce   :  { %1058 = vmatmul.mubr.msk.bf16.vlgmr.msra.gmra.mrb[16].mxu1 %vm173_vm2, %v563_v8 }
 0xdcf   :  { %1070 = vmatpush3.bf16.msra.mxu1 %v1253_v3  ;;  %1073 = vmatprep.mubr.msk.bf16.mxu1 %vm1195_vm1, %v1194_v4 }
 0xdd0   :  { %1071 = vmatprep.subr.bf16.mxu1 %v1194_v4 }
 0xdd3   :  { %1072 = vmatpush3.bf16.msra.mxu1 %v1270_v7 }
 0xea1   :  { %v601_v9 = vpop.f32.mrb[16].mxu1 }
 0xea2   :  { %v607_v10 = vadd.f32 %v601_v9, %v1300_v21  ;;  %v1059_v12 = vpop.f32.mrb[17].mxu1 }
 0xea3   :  { %v604_v13 = vpop.f32.mrb[18].mxu1 }
 0xea4   :  { %1146 = vtanh.f32 %v607_v10  ;;  %v1060_v15 = vpop.f32.mrb[19].mxu1  ;;  %v956_v19 = vmul.f32 -1.442695, %v607_v10 }
 0xea6   :  { %1148 = vpow2.f32 %v956_v19 }
 0xeae   :  { %v1147_v17 = vpop.eup %1146 }
 0xeaf   :  { %617 = vrot.lane.b32.xlu0 %v1147_v17, %s1197_s3 }
 0xeb0   :  { %v1149_v3 = vpop.eup %1148 }
 0xeb1   :  { %v611_v20 = vadd.f32 1.0, %v1149_v3 }
 0xeb3   :  { %1150 = vrcp.f32 %v611_v20 }
 0xebd   :  { %v1151_v23 = vpop.eup %1150 }
 0xebe   :  { %v615_v7 = vmul.f32 %v1151_v23, %v547_v14 }
 0xf21   :  { %v618_v24 = vpop.permute.xlu0 %617 }
 0xf22   :  { %v620_v4 = vmul.f32 %v1151_v23, %v618_v24 }
 0xf24   :  { %622 = vrot.lane.b32.xlu1 %v620_v4, %s1198_s14 }
 0xf96   :  { %v623_v16 = vpop.permute.xlu1 %622 }
 0xf97   :  { %v625_v21 = vadd.f32 %v623_v16, %v615_v7 }
 0xf99   :  { %1152 = vtanh.f32 %v625_v21 }
 0xfa3   :  { %v1153_v25 = vpop.eup %1152 }
 0xfa4   :  { %628 = vrot.lane.b32.xlu0 %v1153_v25, %s1197_s3 }
0x1016   :  { %v629_v26 = vpop.permute.xlu0 %628 }
0x1017   :  { %v1384_v28 = vmul.f32 %v1151_v23, %v629_v26 }
0x1019   :  { %v638_v29 = vpack.c.bf16 %v1384_v28, %v1384_v28 }
0x101b   :  { %640 = vrot.lane.b32.xlu1 %v638_v29, %s1198_s14 }
0x108d   :  { %v641_v30 = vpop.permute.xlu1 %640 }
0x108e   :  { %1066 = vmatmul.mubr.msk.bf16.vlgmr.msra.gmra.mrb[12].mxu0 %vm173_vm2, %v641_v30 }
0x1161   :  { %v679_v31 = vpop.f32.mrb[12].mxu0 }
0x1162   :  { %v685_v32 = vadd.f32 %v679_v31, %v1292_v11  ;;  %v1067_v33 = vpop.f32.mrb[13].mxu0 }
0x1163   :  { %v682_v34 = vpop.f32.mrb[14].mxu0 }
0x1164   :  { %1154 = vtanh.f32 %v685_v32  ;;  %v1068_v35 = vpop.f32.mrb[15].mxu0  ;;  %v958_v37 = vmul.f32 -1.442695, %v685_v32 }
0x1166   :  { %1156 = vpow2.f32 %v958_v37 }
0x116e   :  { %v1155_v36 = vpop.eup %1154 }
0x116f   :  { %695 = vrot.lane.b32.xlu0 %v1155_v36, %s1197_s3 }
0x1170   :  { %v1157_v38 = vpop.eup %1156 }
0x1171   :  { %v689_v39 = vadd.f32 1.0, %v1157_v38 }
0x1173   :  { %1158 = vrcp.f32 %v689_v39 }
0x117d   :  { %v1159_v40 = vpop.eup %1158 }
0x117e   :  { %v693_v44 = vmul.f32 %v1159_v40, %v625_v21 }
0x11e1   :  { %v696_v41 = vpop.permute.xlu0 %695 }
0x11e2   :  { %v698_v42 = vmul.f32 %v1159_v40, %v696_v41 }
0x11e4   :  { %700 = vrot.lane.b32.xlu1 %v698_v42, %s1198_s14 }
0x1256   :  { %v701_v22 = vpop.permute.xlu1 %700 }
0x1257   :  { %v703_v11 = vadd.f32 %v701_v22, %v693_v44 }
0x1259   :  { %1160 = vtanh.f32 %v703_v11 }
0x1263   :  { %v1161_v45 = vpop.eup %1160 }
0x1264   :  { %706 = vrot.lane.b32.xlu0 %v1161_v45, %s1197_s3 }
0x12d6   :  { %v707_v46 = vpop.permute.xlu0 %706 }
0x12d7   :  { %v709_v48 = vmul.f32 %v1159_v40, %v707_v46 }
0x12d9   :  { %v716_v49 = vpack.c.bf16 %v709_v48, %v709_v48 }
0x12db   :  { %718 = vrot.lane.b32.xlu1 %v716_v49, %s1198_s14 }
0x134d   :  { %v719_v50 = vpop.permute.xlu1 %718 }
0x134e   :  { %1074 = vmatmul.mubr.msk.bf16.vlgmr.msra.gmra.mrb[20].mxu1 %vm173_vm2, %v719_v50 }
0x1421   :  { %v757_v51 = vpop.f32.mrb[20].mxu1 }
0x1422   :  { %v763_v52 = vadd.f32 %v757_v51, %v1298_v18  ;;  %v1075_v53 = vpop.f32.mrb[21].mxu1 }
0x1423   :  { %v760_v54 = vpop.f32.mrb[22].mxu1 }
0x1424   :  { %1162 = vtanh.f32 %v763_v52  ;;  %v1076_v55 = vpop.f32.mrb[23].mxu1  ;;  %v960_v57 = vmul.f32 -1.442695, %v763_v52 }
0x1426   :  { %1164 = vpow2.f32 %v960_v57 }
0x142e   :  { %v1163_v56 = vpop.eup %1162 }
0x142f   :  { %773 = vrot.lane.b32.xlu0 %v1163_v56, %s1197_s3 }
0x1430   :  { %v1165_v58 = vpop.eup %1164 }
0x1431   :  { %v767_v59 = vadd.f32 1.0, %v1165_v58 }
0x1433   :  { %1166 = vrcp.f32 %v767_v59 }
0x143d   :  { %v1167_v60 = vpop.eup %1166 }
0x143e   :  { %v771_v18 = vmul.f32 %v1167_v60, %v703_v11 }
0x14a1   :  { %v774_v61 = vpop.permute.xlu0 %773 }
0x14a2   :  { %v776_v62 = vmul.f32 %v1167_v60, %v774_v61 }
0x14a4   :  { %778 = vrot.lane.b32.xlu1 %v776_v62, %s1198_s14 }
0x14a8   :  { %243 = vrot.lane.b32.xlu1 %v1307_v43, %s1198_s14  ;;  %v1104_v43 = vld [vmem:[%s1484_s4] sm:$0xff]   ;;  %s1199_s4 = smov [#allocation4]  }
0x14a9   :  { %1077 = vmatprep.subr.bf16.mxu0 %v1104_v43  ;;  %s924_s19 = sshll.u32 %s1199_s4, 4  ;;  %s925_s19 = int_to_ptr.vmem [resolvable:$true] %s924_s19 }
0x14aa   :  { %1078 = vmatpush3.bf16.msra.mxu0 %v1104_v43  ;;  %s1170_s20 = scalar_lea.vmem %s925_s19, 128  ;;  %p1175_p1 = scmp.lt.s32.totalorder %s925_s19, %s925_s19 }
0x14ab   :  { %1079 = vmatprep.subr.bf16.mxu0 %v1105_v6  ;;  %p1171_p0 = scmp.ne.s32.totalorder %s925_s19, %s1170_s20  ;;  %p1176_p2 = scmp.lt.s32.totalorder %s1170_s20, %s1170_s20 }
0x14ac   :  { %399 = vrot.lane.b32.xlu1 %v1338_v27, %s1198_s14 }
0x14ad   :  { %p1177_p3 = por %p1176_p2, %p1175_p1 }
0x14ae   :  { %1080 = vmatpush3.bf16.msra.mxu0 %v1105_v6 }
0x14af   :  { %p1178_p4 = pnand %p1177_p3, %p1171_p0 }
0x14b0   :  { %555 = vrot.lane.b32.xlu1 %v1369_v5, %s1198_s14 }
0x14b4   :  { %711 = vrot.lane.b32.xlu1 %v709_v48, %s1198_s14 }
0x1516   :  { %v779_v0 = vpop.permute.xlu1 %778 }
0x1517   :  { %v781_v14 = vadd.f32 %v779_v0, %v771_v18 }
0x1519   :  { %1168 = vtanh.f32 %v781_v14 }
0x151a   :  { %v244_v1 = vpop.permute.xlu1 %243 }
0x151b   :  { %246 = vst.msk [vmem:[#allocation3] sm:$0xff] %vm173_vm2, %v244_v1 }
0x151e   :  { %v400_v2 = vpop.permute.xlu1 %399 }
0x151f   :  { %402 = vst.msk [vmem:[#allocation3 + $0x10] sm:$0xff] %vm173_vm2, %v400_v2 }
0x1522   :  { %v556_v27 = vpop.permute.xlu1 %555  ;;  %v793_v17 = vld [vmem:[#allocation3] sm:$0xff] }
0x1523   :  { %v1169_v5 = vpop.eup %1168  ;;  %558 = vst.msk [vmem:[#allocation3 + $0x20] sm:$0xff] %vm173_vm2, %v556_v27 }
0x1524   :  { %784 = vrot.lane.b32.xlu0 %v1169_v5, %s1197_s3 }
0x1526   :  { %v712_v8 = vpop.permute.xlu1 %711 }
0x1527   :  { %714 = vst.msk [vmem:[#allocation3 + $0x30] sm:$0xff] %vm173_vm2, %v712_v8 }
0x1528   :  { %321 = vrot.lane.b32.xlu0 %v1322_v63, %s1198_s14 }
0x152a   :  { %v797_v23 = vld [vmem:[#allocation3 + $0x20] sm:$0xff] }
0x152c   :  { %477 = vrot.lane.b32.xlu0 %v1354_v47, %s1198_s14  ;;  %v795_v47 = vld [vmem:[#allocation3 + $0x10] sm:$0xff] }
0x152e   :  { %v799_v21 = vld [vmem:[#allocation3 + $0x30] sm:$0xff] }
0x1530   :  { %633 = vrot.lane.b32.xlu0 %v1384_v28, %s1198_s14 }
0x1596   :  { %v785_v9 = vpop.permute.xlu0 %784 }
0x1597   :  { %v787_v10 = vmul.f32 %v1167_v60, %v785_v9 }
0x1599   :  { %789 = vrot.lane.b32.xlu0 %v787_v10, %s1198_s14 }
0x159a   :  { %v322_v12 = vpop.permute.xlu0 %321 }
0x159b   :  { %324 = vst.msk [vmem:[#allocation3 + $0x8] sm:$0xff] %vm173_vm2, %v322_v12 }
0x159e   :  { %v478_v13 = vpop.permute.xlu0 %477 }
0x159f   :  { %480 = vst.msk [vmem:[#allocation3 + $0x18] sm:$0xff] %vm173_vm2, %v478_v13 }
0x15a2   :  { %v634_v15 = vpop.permute.xlu0 %633  ;;  %v794_v19 = vld [vmem:[#allocation3 + $0x8] sm:$0xff] }
0x15a3   :  { %636 = vst.msk [vmem:[#allocation3 + $0x28] sm:$0xff] %vm173_vm2, %v634_v15  ;;  %v801_v63 = vpack.c.bf16 %v794_v19, %v793_v17 }
0x15a5   :  { %1081 = vmatprep.mubr.msk.bf16.mxu0 %vm173_vm2, %v801_v63 }
0x15a6   :  { %v796_v3 = vld [vmem:[#allocation3 + $0x18] sm:$0xff] }
0x15a7   :  { %v802_v20 = vpack.c.bf16 %v796_v3, %v795_v47 }
0x15a9   :  { %1082 = vmatmul.mubr.msk.bf16.vlgmr.msra.gmra.mrb[16].mxu0 %vm173_vm2, %v802_v20 }
0x15aa   :  { %v798_v24 = vld [vmem:[#allocation3 + $0x28] sm:$0xff] }
0x15ab   :  { %v803_v4 = vpack.c.bf16 %v798_v24, %v797_v23 }
0x15ad   :  { %1085 = vmatprep.mubr.msk.bf16.mxu0 %vm173_vm2, %v803_v4 }
0x160b   :  { %v790_v7 = vpop.permute.xlu0 %789 }
0x160c   :  { %792 = vst.msk [vmem:[#allocation3 + $0x38] sm:$0xff] %vm173_vm2, %v790_v7  ;;  %v913_v16 = vsel %vm173_vm2, %v790_v7, %v781_v14 }
0x160d   :  { %915 = vst.msk [vmem:[#allocation4] sm:$0xff] %vm914_vm3, %v913_v16 }
0x1613   :  { %v800_v25 = vld [vmem:[#allocation3 + $0x38] sm:$0xff] }
0x1614   :  { %v804_v26 = vpack.c.bf16 %v800_v25, %v799_v21 }
0x1616   :  { %1086 = vmatmul.mubr.msk.bf16.gmra.mrb[20].mxu0 %vm173_vm2, %v804_v26 }
0x1617   :  { %1181 = shalt.err (!%p1178_p4)
}
0x1618   :  { %s1182_s23 = scalar_lea.hbm %s1487_s7, 128 }
0x1619   :  { %p1183_p5 = scmp.ne.s32.totalorder %s1487_s7, %s1182_s23  ;;  %p1186_p6 = scmp.lt.u32.totalorder %s1182_s23, %s1487_s7 }
0x161b   :  { %p1188_p7 = pnand %p1186_p6, %p1183_p5 }
0x161d   :  { %1191 = shalt.err (!%p1188_p7)
}
0x161e   :  { %927 = dma.vmem_to_hbm [thread:$0]  %s925_s19, 128, %s1487_s7, [#allocation5]   ;;  %v961_v28 = vld [vmem:[%s1485_s5] ss:$0 sm:$0xff] }
0x167c   :  { %v1083_v29 = vpop.f32.mrb[16].mxu0 }
0x167d   :  { %v883_v30 = vadd.f32 %v1083_v29, %v961_v28  ;;  %v874_v31 = vpop.f32.mrb[17].mxu0 }
0x167e   :  { %v875_v32 = vadd.f32 %v961_v28, %v874_v31  ;;  %v1084_v33 = vpop.f32.mrb[18].mxu0 }
0x167f   :  { %907 = vst.msk [vmem:[%s1486_s6 + $0x10] sm:$0xff] %vm70_vm0, %v883_v30  ;;  %v886_v34 = vadd.f32 %v1084_v33, %v961_v28  ;;  %v877_v35 = vpop.f32.mrb[19].mxu0 }
0x1680   :  { %905 = vst.msk [vmem:[%s1486_s6] sm:$0xff] %vm70_vm0, %v875_v32  ;;  %v878_v36 = vadd.f32 %v961_v28, %v877_v35 }
0x1681   :  { %908 = vst.msk [vmem:[%s1486_s6 + $0x18] sm:$0xff] %vm70_vm0, %v886_v34 }
0x1682   :  { %906 = vst.msk [vmem:[%s1486_s6 + $0x8] sm:$0xff] %vm70_vm0, %v878_v36 }
0x16e9   :  { %v1087_v37 = vpop.f32.mrb[20].mxu0 }
0x16ea   :  { %v899_v38 = vadd.f32 %v1087_v37, %v961_v28  ;;  %v890_v39 = vpop.f32.mrb[21].mxu0 }
0x16eb   :  { %v891_v40 = vadd.f32 %v961_v28, %v890_v39  ;;  %v1088_v41 = vpop.f32.mrb[22].mxu0 }
0x16ec   :  { %911 = vst.msk [vmem:[%s1486_s6 + $0x30] sm:$0xff] %vm70_vm0, %v899_v38  ;;  %v902_v42 = vadd.f32 %v1088_v41, %v961_v28  ;;  %v893_v44 = vpop.f32.mrb[23].mxu0 }
0x16ed   :  { %909 = vst.msk [vmem:[%s1486_s6 + $0x20] sm:$0xff] %vm70_vm0, %v891_v40  ;;  %v894_v22 = vadd.f32 %v961_v28, %v893_v44 }
0x16ee   :  { %912 = vst.msk [vmem:[%s1486_s6 + $0x38] sm:$0xff] %vm70_vm0, %v902_v42 }
0x16ef   :  { %910 = vst.msk [vmem:[%s1486_s6 + $0x28] sm:$0xff] %vm70_vm0, %v894_v22 }
0x16f0   :  { %1192 = dma.done.wait [#allocation5], 128  }
0x16f1   :  { %1193 = vsyncadd [#allocation5], 4294967168 }
0x16f2   :  { %933 = vsyncpa [#allocation5], 1 }

</bundles_post_ra>
